<compile_context>
chip_gen: v7x
topology: tpu7x:2x2x1
jax: 0.10.0
libtpu: 0.0.40
codegen_flags: <defaults>
</compile_context>

<pallas_src>
import jax
import jax.numpy as jnp
from jax.experimental import pallas as pl
from jax.experimental.pallas import tpu as pltpu


def _round_up(x, m):
    return ((x + m - 1) // m) * m


def _sublane(dtype):
    # Native sublane multiple: 8 for f32, 16 for bf16, 32 for int8/fp8.
    return max(8, 32 // jnp.dtype(dtype).itemsize)


def _condense_linear_kernel(x_ref, w_ref, b_ref, o_ref):
    # x_ref: (tm, K)   input tile (already column-selected, K = padded F_sel)
    # w_ref: (K,  tn)  weight panel (full contraction axis)
    # b_ref: (1,  tn)  f32 bias
    # o_ref: (tm, tn)  output tile (lane-dense, tn % 128 == 0)
    acc = jnp.dot(x_ref[...], w_ref[...], preferred_element_type=jnp.float32)
    o_ref[...] = (acc + b_ref[...]).astype(o_ref.dtype)


def make_condense_linear(index, weight, bias, in_features, *,
                         tile_m=128, tile_n=256, compute_dtype=None,
                         vmem_budget_bytes=48 * 1024 * 1024):
    """Build a CondenseLinear forward with all parameter glue hoisted out.

    index  : (F_sel,)        int columns of x selected by index_select
    weight : (F_out, F_sel)  nn.Linear.weight
    bias   : (F_out,)        nn.Linear.bias
    Returns forward(x: (B, in_features)) -> (B, F_out).

    compute_dtype: dtype fed to the MXU (jnp.bfloat16 recommended on v6e/v7x;
    accumulation stays f32). Defaults to the weight dtype.
    """
    F_out, F_sel = weight.shape
    assert index.shape == (F_sel,)
    # PyTorch index_select raises on out-of-range indices; mirror that here
    # instead of silently dropping them.
    assert bool(jnp.all((index >= 0) & (index < in_features))), \
        "index entries out of range for in_features"
    if compute_dtype is None:
        compute_dtype = weight.dtype

    # --- one-time parameter prep (NOT in the per-call path) ---------------
    # Contraction stays at F_sel (zero-free weight); pad K/N to 128 once.
    k_pad = _round_up(F_sel, 128)
    n_pad = _round_up(F_out, 128)
    w_p = jnp.zeros((k_pad, n_pad), compute_dtype).at[:F_sel, :F_out].set(
        weight.astype(compute_dtype).T)
    b_p = jnp.zeros((1, n_pad), jnp.float32).at[0, :F_out].set(
        bias.astype(jnp.float32))

    index = index.astype(jnp.int32)
    itemsize = jnp.dtype(compute_dtype).itemsize
    sub = _sublane(compute_dtype)

    @jax.jit
    def forward(x):
        B = x.shape[0]
        out_dtype = x.dtype
        tm = min(tile_m, _round_up(B, sub))
        m_pad = _round_up(B, tm)

        # Column gather + pad fused into a single write of the input slab.
        x_sel = jnp.take(x, index, axis=1).astype(compute_dtype)
        x_p = jnp.zeros((m_pad, k_pad), compute_dtype).at[:B, :F_sel].set(x_sel)

        # VMEM budget for the resident-weight path (2x for double-buffering;
        # conservative w.r.t. v7x's 64 MiB physical VMEM).
        resident_bytes = (
            2 * w_p.size * itemsize
            + b_p.size * 4
            + 2 * tm * k_pad * itemsize
            + 2 * tm * n_pad * jnp.dtype(out_dtype).itemsize)

        if resident_bytes <= vmem_budget_bytes:
            # ---- Path A: VMEM-resident weight, one dot per M tile ----------
            vmem_limit = int(max(min(resident_bytes + (4 << 20), 60 << 20),
                                 32 << 20))
            out = pl.pallas_call(
                _condense_linear_kernel,
                out_shape=jax.ShapeDtypeStruct((m_pad, n_pad), out_dtype),
                grid_spec=pltpu.PrefetchScalarGridSpec(
                    num_scalar_prefetch=0,
                    grid=(m_pad // tm,),
                    in_specs=[
                        pl.BlockSpec((tm, k_pad), lambda i: (i, 0)),     # x
                        pl.BlockSpec((k_pad, n_pad), lambda i: (0, 0)),  # W (resident)
                        pl.BlockSpec((1, n_pad), lambda i: (0, 0)),      # bias
                    ],
                    out_specs=pl.BlockSpec((tm, n_pad), lambda i: (i, 0)),
                ),
                compiler_params=pltpu.CompilerParams(
                    dimension_semantics=("parallel",),
                    vmem_limit_bytes=vmem_limit,
                ),
            )(x_p, w_p, b_p)
        else:
            # ---- Path B: N-outer / M-inner grid, full-K weight panels ------
            # Each (k_pad, tn) weight panel is DMA'd once per N tile (constant
            # across the inner M axis), not once per (i, k) step.
            tn = tile_n
            while n_pad % tn:
                tn //= 2
            tn = max(tn, 128)
            # TODO(synk): for K so large that a (tm,k_pad)+(k_pad,tn) pair no
            # longer fits VMEM, fall back to a K-tiled accumulator GEMM.
            out = pl.pallas_call(
                _condense_linear_kernel,
                out_shape=jax.ShapeDtypeStruct((m_pad, n_pad), out_dtype),
                grid_spec=pltpu.PrefetchScalarGridSpec(
                    num_scalar_prefetch=0,
                    grid=(n_pad // tn, m_pad // tm),       # N outer, M inner
                    in_specs=[
                        pl.BlockSpec((tm, k_pad), lambda j, i: (i, 0)),   # x
                        pl.BlockSpec((k_pad, tn), lambda j, i: (0, j)),   # W panel
                        pl.BlockSpec((1, tn), lambda j, i: (0, j)),       # bias
                    ],
                    out_specs=pl.BlockSpec((tm, tn), lambda j, i: (i, j)),
                ),
                compiler_params=pltpu.CompilerParams(
                    dimension_semantics=("parallel", "parallel"),
                ),
            )(x_p, w_p, b_p)

        return out[:B, :F_out]

    return forward


def condense_linear(x, index, weight, bias):
    """One-shot convenience wrapper (prefer make_condense_linear for reuse)."""
    return make_condense_linear(index, weight, bias, x.shape[1])(x)


if __name__ == "__main__":
    # Module config: CondenseLinear(in_features=32, out_features=8, drop_rate=0.5)
    in_features = 32
    out_features = 8
    drop_rate = 0.5
    in_sel = int(in_features * drop_rate)   # 16
    batch = 4

    key = jax.random.PRNGKey(0)
    kx, kw, kb, ki = jax.random.split(key, 4)

    x = jax.random.normal(kx, (batch, in_features), dtype=jnp.float32)
    # nn.Linear(in_sel, out_features): weight (out, in_sel), bias (out,)
    weight = jax.random.normal(kw, (out_features, in_sel), dtype=jnp.float32) * 0.1
    bias = jax.random.normal(kb, (out_features,), dtype=jnp.float32) * 0.1
    # Deterministic 'index' buffer: permutation of feature ids, first in_sel kept
    # (mirrors how CondenseNet fills the registered LongTensor buffer).
    index = jax.random.permutation(ki, in_features)[:in_sel].astype(jnp.int32)

    # Pure-JAX reference of the PyTorch forward.
    y_ref = x[:, index] @ weight.T + bias

    # f32 compute path (matches the PyTorch reference tightly).
    fwd = make_condense_linear(index, weight, bias, in_features)
    y = jax.block_until_ready(fwd(x))
    assert y.shape == (batch, out_features)
    assert jnp.allclose(y, y_ref, atol=1e-5, rtol=1e-5), "f32 mismatch vs reference"

    # bf16 compute path (MXU-native on v6e/v7x); rounding => looser tolerance.
    fwd_bf16 = make_condense_linear(index, weight, bias, in_features,
                                    compute_dtype=jnp.bfloat16)
    y16 = jax.block_until_ready(fwd_bf16(x))
    assert y16.shape == (batch, out_features)
    assert jnp.allclose(y16, y_ref, atol=5e-2, rtol=5e-2), "bf16 mismatch vs reference"

    print("KERNEL_OK")
</pallas_src>

<mosaic_0001>
module attributes {stable_mosaic.version = 11 : i64} {
  func.func @_condense_linear_kernel(%arg0: i32, %arg1: memref<8x128xf32, #tpu.memory_space<vmem>>, %arg2: memref<128x128xf32, #tpu.memory_space<vmem>>, %arg3: memref<1x128xf32, #tpu.memory_space<vmem>>, %arg4: memref<8x128xf32, #tpu.memory_space<vmem>>) attributes {dimension_semantics = [#tpu.dimension_semantics<parallel>], iteration_bounds = array<i64: 1>, scalar_prefetch = 0 : i64, scratch_operands = 0 : i64, tpu.core_type = #tpu.core_type<tc>, window_params = [{transform_indices = @transform_0, window_bounds = array<i64: 8, 128>}, {pipeline_mode = #tpu.pipeline_mode<synchronous>, transform_indices = @transform_1, window_bounds = array<i64: 128, 128>}, {pipeline_mode = #tpu.pipeline_mode<synchronous>, transform_indices = @transform_2, window_bounds = array<i64: 1, 128>}, {transform_indices = @transform_3, window_bounds = array<i64: 8, 128>}]} {
    %c0 = arith.constant 0 : index
    %c0_0 = arith.constant 0 : index
    %0 = vector.load %arg1[%c0, %c0_0] : memref<8x128xf32, #tpu.memory_space<vmem>>, vector<8x128xf32>
    %c0_1 = arith.constant 0 : index
    %c0_2 = arith.constant 0 : index
    %1 = vector.load %arg2[%c0_1, %c0_2] : memref<128x128xf32, #tpu.memory_space<vmem>>, vector<128x128xf32>
    %cst = arith.constant dense<0.000000e+00> : vector<8x128xf32>
    %2 = tpu.matmul %0, %1, %cst {dimension_numbers = #tpu.dot_dimension_numbers<[1], [0], [0], [1], [0, 0, 1, 1], [], []>} : vector<8x128xf32>, vector<128x128xf32>, vector<8x128xf32> -> vector<8x128xf32>
    %c0_3 = arith.constant 0 : index
    %c0_4 = arith.constant 0 : index
    %3 = vector.load %arg3[%c0_3, %c0_4] : memref<1x128xf32, #tpu.memory_space<vmem>>, vector<1x128xf32>
    %4 = vector.broadcast %3 : vector<1x128xf32> to vector<8x128xf32>
    %5 = arith.addf %2, %4 : vector<8x128xf32>
    %c0_5 = arith.constant 0 : index
    %c0_6 = arith.constant 0 : index
    %6 = vector.load %arg4[%c0_5, %c0_6] : memref<8x128xf32, #tpu.memory_space<vmem>>, vector<8x128xf32>
    tpu.vector_store %arg4[%c0_5, %c0_6], %5 {strides = array<i32>} : memref<8x128xf32, #tpu.memory_space<vmem>>, vector<8x128xf32>,
    return
  }
  func.func @transform_0(%arg0: i32) -> (i32, i32) {
    %c0_i32 = arith.constant 0 : i32
    %c0_i32_0 = arith.constant 0 : i32
    return %arg0, %c0_i32 : i32, i32
  }
  func.func @transform_1(%arg0: i32) -> (i32, i32) {
    %c0_i32 = arith.constant 0 : i32
    %c0_i32_0 = arith.constant 0 : i32
    %c0_i32_1 = arith.constant 0 : i32
    return %c0_i32, %c0_i32_0 : i32, i32
  }
  func.func @transform_2(%arg0: i32) -> (i32, i32) {
    %c0_i32 = arith.constant 0 : i32
    %c0_i32_0 = arith.constant 0 : i32
    %c0_i32_1 = arith.constant 0 : i32
    return %c0_i32, %c0_i32_0 : i32, i32
  }
  func.func @transform_3(%arg0: i32) -> (i32, i32) {
    %c0_i32 = arith.constant 0 : i32
    %c0_i32_0 = arith.constant 0 : i32
    return %arg0, %c0_i32 : i32, i32
  }
}

</mosaic_0001>

<bundles_post_ra>
// kernel: forward.1
= control target key start
LH: loop header
LB: loop body
LE: loop exit
PB: predicated region body
PF: predicated region fallthrough
CT: control target
= control target key end

     0   :  { %8 = vsyncpa [#allocation3], 0  ;;  %s235_s12 = smov [#allocation2]   ;;  %s282_s0 = inlined_call_operand.vmem [shape: f32[8,128], index: 0, kind: input, shape index: {}]   ;;  %s283_s1 = inlined_call_operand.hbm [shape: f32[128,128], index: 1, kind: input, shape index: {}]   ;;  %s284_s2 = inlined_call_operand.vmem [shape: f32[1,128], index: 2, kind: input, shape index: {}]   ;;  %s285_s3 = inlined_call_operand.vmem [shape: f32[8,128], index: 3, kind: output, shape index: {}]  }
   0x1   :  { %s16_s13 = sshll.u32 %s235_s12, 4  ;;  %s211_s16 = scalar_lea.hbm %s283_s1, 2048  ;;  %s17_s13 = int_to_ptr.vmem [resolvable:$true] %s16_s13 }
   0x2   :  { %p212_p0 = scmp.ne.s32.totalorder %s283_s1, %s211_s16  ;;  %p215_p1 = scmp.lt.u32.totalorder %s211_s16, %s283_s1 }
   0x4   :  { %p217_p2 = pnand %p215_p1, %p212_p0 }
   0x6   :  { %220 = shalt.err (!%p217_p2)
}
   0x7   :  { %s221_s21 = scalar_lea.vmem %s17_s13, 2048  ;;  %p226_p4 = scmp.lt.s32.totalorder %s17_s13, %s17_s13 }
   0x8   :  { %p222_p3 = scmp.ne.s32.totalorder %s17_s13, %s221_s21  ;;  %p227_p5 = scmp.lt.s32.totalorder %s221_s21, %s221_s21 }
   0xa   :  { %p228_p6 = por %p227_p5, %p226_p4 }
   0xc   :  { %p229_p7 = pnand %p228_p6, %p222_p3 }
   0xe   :  { %232 = shalt.err (!%p229_p7)
}
   0xf   :  { %s236_s22 = smov 128   ;;  %s237_s23 = smov 8  }
  0x10   :  { %22 = dma.hbm_to_vmem [thread:$0]  %s283_s1, 2048, %s17_s13, [#allocation3], %s236_s22, %s236_s22, %s237_s23  }
  0x11   :  { %233 = dma.done.wait [#allocation3], 2048  }
  0x12   :  { %234 = vsyncadd [#allocation3], 4294965248  ;;  %v238_v0 = vmov 0.0|0.0   ;;  %vm239_vm0 = vmmov 0   ;;  %v240_v1 = vmov 0.0   ;;  %v29_v2 = vld [vmem:[#allocation2] sm:$0xff] }
  0x13   :  { %181 = vmatprep.subr.bf16.mxu0 %v238_v0  ;;  %178 = vmatprep.mubr.msk.f32.mxu0 %vm239_vm0, %v240_v1  ;;  %v30_v3 = vld [vmem:[#allocation2 + $0x8] sm:$0xff]  ;;  %v31_v4 = vld [vmem:[#allocation2 + $0x10] sm:$0xff]  ;;  %v32_v6 = vld [vmem:[#allocation2 + $0x18] sm:$0xff] }
  0x14   :  { %v182_v5 = vpack.c.bf16 %v30_v3, %v29_v2  ;;  %v185_v7 = vpack.c.bf16 %v32_v6, %v31_v4  ;;  %v33_v8 = vld [vmem:[#allocation2 + $0x20] sm:$0xff]  ;;  %v34_v9 = vld [vmem:[#allocation2 + $0x28] sm:$0xff]  ;;  %v35_v11 = vld [vmem:[#allocation2 + $0x30] sm:$0xff] }
  0x15   :  { %v188_v10 = vpack.c.bf16 %v34_v9, %v33_v8  ;;  %v36_v12 = vld [vmem:[#allocation2 + $0x38] sm:$0xff]  ;;  %v37_v14 = vld [vmem:[#allocation2 + $0x40] sm:$0xff]  ;;  %v38_v15 = vld [vmem:[#allocation2 + $0x48] sm:$0xff] }
  0x16   :  { %183 = vmatpush3.bf16.msra.mxu0 %v182_v5  ;;  %v191_v13 = vpack.c.bf16 %v36_v12, %v35_v11  ;;  %v194_v16 = vpack.c.bf16 %v38_v15, %v37_v14  ;;  %v39_v17 = vld [vmem:[#allocation2 + $0x50] sm:$0xff]  ;;  %v40_v18 = vld [vmem:[#allocation2 + $0x58] sm:$0xff]  ;;  %v41_v20 = vld [vmem:[#allocation2 + $0x60] sm:$0xff] }
  0x17   :  { %184 = vmatprep.subr.bf16.mxu0 %v238_v0  ;;  %v197_v19 = vpack.c.bf16 %v40_v18, %v39_v17  ;;  %v42_v21 = vld [vmem:[#allocation2 + $0x68] sm:$0xff]  ;;  %v43_v23 = vld [vmem:[#allocation2 + $0x70] sm:$0xff]  ;;  %v44_v24 = vld [vmem:[#allocation2 + $0x78] sm:$0xff] }
  0x18   :  { %v200_v22 = vpack.c.bf16 %v42_v21, %v41_v20  ;;  %v203_v25 = vpack.c.bf16 %v44_v24, %v43_v23  ;;  %v28_v26 = vld [vmem:[%s282_s0] sm:$0xff] }
  0x19   :  { %v128_v27 = vld [vmem:[%s284_s2] ss:$0 sm:$0xff] }
  0x1a   :  { %186 = vmatpush3.bf16.msra.mxu0 %v185_v7 }
  0x1b   :  { %187 = vmatprep.subr.bf16.mxu0 %v238_v0 }
  0x1e   :  { %189 = vmatpush3.bf16.msra.mxu0 %v188_v10 }
  0x1f   :  { %190 = vmatprep.subr.bf16.mxu0 %v238_v0 }
  0x22   :  { %192 = vmatpush3.bf16.msra.mxu0 %v191_v13 }
  0x23   :  { %193 = vmatprep.subr.bf16.mxu0 %v238_v0 }
  0x26   :  { %195 = vmatpush3.bf16.msra.mxu0 %v194_v16 }
  0x27   :  { %196 = vmatprep.subr.bf16.mxu0 %v238_v0 }
  0x2a   :  { %198 = vmatpush3.bf16.msra.mxu0 %v197_v19 }
  0x2b   :  { %199 = vmatprep.subr.bf16.mxu0 %v238_v0 }
  0x2e   :  { %201 = vmatpush3.bf16.msra.mxu0 %v200_v22 }
  0x2f   :  { %202 = vmatprep.subr.bf16.mxu0 %v238_v0 }
  0x32   :  { %204 = vmatpush3.bf16.msra.mxu0 %v203_v25 }
  0x35   :  { %179 = vmatmul.mubr.f32.vlgmr.msra.gmra.mrb[0].mxu0 %v28_v26 }
 0x108   :  { %v118_v28 = vpop.f32.mrb[0].mxu0 }
 0x109   :  { %v119_v29 = vadd.f32 %v128_v27, %v118_v28  ;;  %v180_v30 = vpop.f32.mrb[1].mxu0 }
 0x10b   :  { %122 = vst [vmem:[%s285_s3] sm:$0xff] %v119_v29 }
 0x10c   :  { %127 = vsyncpa [#allocation3], 1 }

</bundles_post_ra>
